<compile_context>
chip_gen: v6e
topology: v6e:2x2x1
jax: 0.10.0
libtpu: 0.0.40
codegen_flags: <defaults>
</compile_context>

<pallas_src>
import jax
import jax.numpy as jnp
import numpy as np
from jax.experimental import pallas as pl
from jax.experimental.pallas import tpu as pltpu


def _rosenbrock_kernel(theta_ref, loss_ref, con_ref):
    th = theta_ref[...]                                        # (4, TB) f32: [tx; ty; tp0; tp1]

    # One shared EUP exp pass over all 4 parameter rows, then stable sigmoid/softplus:
    #   sigmoid(t)  = where(t>=0, 1, e) / (1 + e)      with e = exp(-|t|)
    #   softplus(t) = max(t, 0) + log1p(e)
    e = jnp.exp(-jnp.abs(th))                                  # (4, TB)
    denom = 1.0 + e
    sig = jnp.where(th >= 0.0, 1.0, e) / denom                 # exact f32 divide (accuracy)
    sp = jnp.maximum(th, 0.0) + jnp.log1p(e)

    # Per-row manifold map: rows 0,1 -> OpenInterval (width 3.0), rows 2,3 -> PositiveReal.
    row = jax.lax.broadcasted_iota(jnp.int32, th.shape, 0)     # sublane index
    lower = jnp.where(row == 0, -1.5, -0.5)
    mapped = jnp.where(row < 2, lower + 3.0 * sig, sp)         # (4, TB) = [x; y; p0; p1]

    x = mapped[0:1, :]
    y = mapped[1:2, :]
    p0 = mapped[2:3, :]
    p1 = mapped[3:4, :]

    # Rosenbrock loss, lane-dense (1, TB) store.
    loss_ref[...] = (1.0 - x) ** 2 + 100.0 * (y - x * x) ** 2

    # Cubic/line constraints, assembled once and stored as one (2, TB) lane-dense slab.
    xm1 = x - 1.0
    c0 = xm1 * xm1 * xm1 - y + 1.0 + p0
    c1 = x + y - 2.0 + p1
    con_ref[...] = jnp.concatenate([c0, c1], axis=0)


def rosenbrock_cubic_line_batched(theta, *, lane_tile=None):
    """Batched forward pass.

    theta: (4, B) f32 unconstrained parameters, one problem instance per column
           (rows: theta_x, theta_y, theta_p0, theta_p1). B must be a multiple of 128.
    Returns (loss (1, B) f32, constraint (2, B) f32) — column i is one module forward.
    """
    p, b = theta.shape
    assert p == 4, "theta must be (4, B): [theta_x, theta_y, theta_p0, theta_p1] rows"
    assert b % 128 == 0, "batch axis must be a multiple of 128 (lane width)"
    if lane_tile is None:
        # 256-lane tiles keep per-step overhead low; >=2 steps lets v7x split across TCs.
        lane_tile = min(b, 256)
    assert lane_tile % 128 == 0 and b % lane_tile == 0
    num_blocks = b // lane_tile

    return pl.pallas_call(
        _rosenbrock_kernel,
        out_shape=(
            jax.ShapeDtypeStruct((1, b), jnp.float32),
            jax.ShapeDtypeStruct((2, b), jnp.float32),
        ),
        grid=(num_blocks,),
        in_specs=[pl.BlockSpec((4, lane_tile), lambda i: (0, i))],
        out_specs=(
            pl.BlockSpec((1, lane_tile), lambda i: (0, i)),
            pl.BlockSpec((2, lane_tile), lambda i: (0, i)),
        ),
        compiler_params=pltpu.CompilerParams(
            dimension_semantics=("parallel",)),
        cost_estimate=pl.CostEstimate(
            flops=40 * b, transcendentals=12 * b, bytes_accessed=28 * b),
    )(theta)


def _reference(theta):
    """float64 numpy reference, vectorized over the batch axis."""
    th = np.asarray(theta, dtype=np.float64)
    x = -1.5 + 3.0 / (1.0 + np.exp(-th[0]))
    y = -0.5 + 3.0 / (1.0 + np.exp(-th[1]))
    p = np.maximum(th[2:4], 0.0) + np.log1p(np.exp(-np.abs(th[2:4])))   # stable softplus
    loss = (1.0 - x) ** 2 + 100.0 * (y - x ** 2) ** 2
    con = np.stack([(x - 1.0) ** 3 - y + 1.0 + p[0], x + y - 2.0 + p[1]])
    return loss, con


if __name__ == "__main__":
    key = jax.random.PRNGKey(0)
    # 512 independent problem instances (multi-start / probe batch), 4 unconstrained
    # parameters each, mirroring numqi's uniform(-1, 1) manifold-parameter init.
    B = 512
    theta = jax.random.uniform(key, (4, B), minval=-1.0, maxval=1.0, dtype=jnp.float32)

    loss, constraint = jax.jit(rosenbrock_cubic_line_batched)(theta)
    jax.block_until_ready((loss, constraint))

    ref_loss, ref_con = _reference(np.asarray(theta))
    np.testing.assert_allclose(np.asarray(loss)[0], ref_loss, rtol=1e-3, atol=1e-3)
    np.testing.assert_allclose(np.asarray(constraint), ref_con, rtol=1e-3, atol=1e-3)

    print("KERNEL_OK")
</pallas_src>

<mosaic_0001>
module attributes {stable_mosaic.version = 11 : i64} {
  func.func @_rosenbrock_kernel(%arg0: i32, %arg1: memref<4x256xf32, #tpu.memory_space<vmem>>, %arg2: memref<1x256xf32, #tpu.memory_space<vmem>>, %arg3: memref<2x256xf32, #tpu.memory_space<vmem>>) attributes {dimension_semantics = [#tpu.dimension_semantics<parallel>], iteration_bounds = array<i64: 2>, scalar_prefetch = 0 : i64, scratch_operands = 0 : i64, tpu.core_type = #tpu.core_type<tc>, window_params = [{transform_indices = @transform_0, window_bounds = array<i64: 4, 256>}, {transform_indices = @transform_1, window_bounds = array<i64: 1, 256>}, {transform_indices = @transform_2, window_bounds = array<i64: 2, 256>}]} {
    %c0 = arith.constant 0 : index
    %c0_0 = arith.constant 0 : index
    %0 = vector.load %arg1[%c0, %c0_0] : memref<4x256xf32, #tpu.memory_space<vmem>>, vector<4x256xf32>
    %1 = math.absf %0 : vector<4x256xf32>
    %cst = arith.constant 0.000000e+00 : f32
    %2 = vector.broadcast %cst : f32 to vector<4x256xf32>
    %3 = arith.subf %2, %1 : vector<4x256xf32>
    %4 = math.exp %3 : vector<4x256xf32>
    %cst_1 = arith.constant 1.000000e+00 : f32
    %5 = vector.broadcast %cst_1 : f32 to vector<4x256xf32>
    %6 = arith.addf %5, %4 : vector<4x256xf32>
    %cst_2 = arith.constant 0.000000e+00 : f32
    %7 = vector.broadcast %cst_2 : f32 to vector<4x256xf32>
    %8 = arith.cmpf oge, %0, %7 : vector<4x256xf32>
    %cst_3 = arith.constant 1.000000e+00 : f32
    %9 = vector.broadcast %cst_3 : f32 to vector<4x256xf32>
    %10 = arith.select %8, %9, %4 : vector<4x256xi1>, vector<4x256xf32>
    %11 = arith.divf %10, %6 : vector<4x256xf32>
    %cst_4 = arith.constant 0.000000e+00 : f32
    %12 = vector.broadcast %cst_4 : f32 to vector<4x256xf32>
    %13 = arith.maximumf %0, %12 : vector<4x256xf32>
    %14 = math.log1p %4 : vector<4x256xf32>
    %15 = arith.addf %13, %14 : vector<4x256xf32>
    %16 = tpu.iota {dimensions = array<i32: 0>} : vector<4x256xi32>
    %c0_i32 = arith.constant 0 : i32
    %17 = vector.broadcast %c0_i32 : i32 to vector<4x256xi32>
    %18 = arith.cmpi eq, %16, %17 : vector<4x256xi32>
    %cst_5 = arith.constant -1.500000e+00 : f32
    %cst_6 = arith.constant -5.000000e-01 : f32
    %19 = vector.broadcast %cst_5 : f32 to vector<4x256xf32>
    %20 = vector.broadcast %cst_6 : f32 to vector<4x256xf32>
    %21 = arith.select %18, %19, %20 : vector<4x256xi1>, vector<4x256xf32>
    %c2_i32 = arith.constant 2 : i32
    %22 = vector.broadcast %c2_i32 : i32 to vector<4x256xi32>
    %23 = arith.cmpi slt, %16, %22 : vector<4x256xi32>
    %cst_7 = arith.constant 3.000000e+00 : f32
    %24 = vector.broadcast %cst_7 : f32 to vector<4x256xf32>
    %25 = arith.mulf %24, %11 : vector<4x256xf32>
    %26 = arith.addf %21, %25 : vector<4x256xf32>
    %27 = arith.select %23, %26, %15 : vector<4x256xi1>, vector<4x256xf32>
    %28 = vector.extract_strided_slice %27 {offsets = [0, 0], sizes = [1, 256], strides = [1, 1]} : vector<4x256xf32> to vector<1x256xf32>
    %29 = vector.extract_strided_slice %27 {offsets = [1, 0], sizes = [1, 256], strides = [1, 1]} : vector<4x256xf32> to vector<1x256xf32>
    %30 = vector.extract_strided_slice %27 {offsets = [2, 0], sizes = [1, 256], strides = [1, 1]} : vector<4x256xf32> to vector<1x256xf32>
    %31 = vector.extract_strided_slice %27 {offsets = [3, 0], sizes = [1, 256], strides = [1, 1]} : vector<4x256xf32> to vector<1x256xf32>
    %cst_8 = arith.constant 1.000000e+00 : f32
    %32 = vector.broadcast %cst_8 : f32 to vector<1x256xf32>
    %33 = arith.subf %32, %28 : vector<1x256xf32>
    %34 = arith.mulf %33, %33 : vector<1x256xf32>
    %35 = arith.mulf %28, %28 : vector<1x256xf32>
    %36 = arith.subf %29, %35 : vector<1x256xf32>
    %37 = arith.mulf %36, %36 : vector<1x256xf32>
    %cst_9 = arith.constant 1.000000e+02 : f32
    %38 = vector.broadcast %cst_9 : f32 to vector<1x256xf32>
    %39 = arith.mulf %38, %37 : vector<1x256xf32>
    %40 = arith.addf %34, %39 : vector<1x256xf32>
    %c0_10 = arith.constant 0 : index
    %c0_11 = arith.constant 0 : index
    %41 = vector.load %arg2[%c0_10, %c0_11] : memref<1x256xf32, #tpu.memory_space<vmem>>, vector<1x256xf32>
    tpu.vector_store %arg2[%c0_10, %c0_11], %40 {strides = array<i32>} : memref<1x256xf32, #tpu.memory_space<vmem>>, vector<1x256xf32>,
    %cst_12 = arith.constant 1.000000e+00 : f32
    %42 = vector.broadcast %cst_12 : f32 to vector<1x256xf32>
    %43 = arith.subf %28, %42 : vector<1x256xf32>
    %44 = arith.mulf %43, %43 : vector<1x256xf32>
    %45 = arith.mulf %44, %43 : vector<1x256xf32>
    %46 = arith.subf %45, %29 : vector<1x256xf32>
    %cst_13 = arith.constant 1.000000e+00 : f32
    %47 = vector.broadcast %cst_13 : f32 to vector<1x256xf32>
    %48 = arith.addf %46, %47 : vector<1x256xf32>
    %49 = arith.addf %48, %30 : vector<1x256xf32>
    %50 = arith.addf %28, %29 : vector<1x256xf32>
    %cst_14 = arith.constant 2.000000e+00 : f32
    %51 = vector.broadcast %cst_14 : f32 to vector<1x256xf32>
    %52 = arith.subf %50, %51 : vector<1x256xf32>
    %53 = arith.addf %52, %31 : vector<1x256xf32>
    %54 = tpu.concatenate %49, %53 in 0 : vector<1x256xf32>, vector<1x256xf32> -> vector<2x256xf32>
    %c0_15 = arith.constant 0 : index
    %c0_16 = arith.constant 0 : index
    %55 = vector.load %arg3[%c0_15, %c0_16] : memref<2x256xf32, #tpu.memory_space<vmem>>, vector<2x256xf32>
    tpu.vector_store %arg3[%c0_15, %c0_16], %54 {strides = array<i32>} : memref<2x256xf32, #tpu.memory_space<vmem>>, vector<2x256xf32>,
    return
  }
  func.func @transform_0(%arg0: i32) -> (i32, i32) {
    %c0_i32 = arith.constant 0 : i32
    %c0_i32_0 = arith.constant 0 : i32
    return %c0_i32, %arg0 : i32, i32
  }
  func.func @transform_1(%arg0: i32) -> (i32, i32) {
    %c0_i32 = arith.constant 0 : i32
    %c0_i32_0 = arith.constant 0 : i32
    return %c0_i32, %arg0 : i32, i32
  }
  func.func @transform_2(%arg0: i32) -> (i32, i32) {
    %c0_i32 = arith.constant 0 : i32
    %c0_i32_0 = arith.constant 0 : i32
    return %c0_i32, %arg0 : i32, i32
  }
}

</mosaic_0001>

<bundles_post_ra>
// kernel: rosenbrock_cubic_line_batched.1
= control target key start
LH: loop header
LB: loop body
LE: loop exit
PB: predicated region body
PF: predicated region fallthrough
CT: control target
= control target key end

     0   :  { %8 = vsyncpa [#allocation3], 0  ;;  %s877_s0 = inlined_call_operand.hbm [shape: f32[4,512], index: 0, kind: input, shape index: {}]   ;;  %s878_s1 = inlined_call_operand.hbm [shape: f32[1,512], index: 1, kind: output, shape index: {0}]   ;;  %s879_s2 = inlined_call_operand.hbm [shape: f32[2,512], index: 2, kind: output, shape index: {1}]  }
   0x1   :  { %10 = vsyncpa [#allocation3 + $0x1], 0 }
   0x2   :  { %11 = vsyncpa [#allocation4], 0 }
   0x3   :  { %13 = vsyncpa [#allocation4 + $0x1], 0 }
   0x4   :  { %14 = vsyncpa [#allocation7], 0 }
   0x5   :  { %16 = vsyncpa [#allocation7 + $0x1], 0  ;;  %s678_s9 = smov 0   ;;  %s680_s10 = smov 0  }
   0x6   :  { %s682_s11 = smov 0   ;;  %s684_s12 = smov 0  }
   0x7 LB: > { %s699_s13 = sadd.s32 4294967295, %s656_s12   ;;  %s449_s14 = sadd.s32 4294967294, %s656_s12   ;;  %s656_s12 = sphi %s684_s12, %s898_s12   ;;  %s652_s11 = sphi %s682_s11, %s897_s11   ;;  %s648_s10 = sphi %s680_s10, %s896_s10   ;;  %s644_s9 = sphi %s678_s9, %s895_s9  }
   0x8   : > { %s703_s15 = sadd.s32 1, %s656_s12   ;;  %s29_s16 = sadd.s32 1, %s652_s11 }
   0x9   : > { %s26_s17 = ssub.s32 %s656_s12, %s703_s15  ;;  %p36_p0 = scmp.ne.s32.totalorder %s652_s11, %s648_s10 }
   0xa   : > { %p27_p1 = scmp.eq.s32.totalorder %s26_s17, 0  ;;  %p37_p2 = scmp.eq.s32.totalorder %s656_s12, 0 }
   0xb   : > { %p42_p3 = scmp.ne.s32.totalorder %s648_s10, %s644_s9  ;;  %p43_p4 = scmp.eq.s32.totalorder %s699_s13, 0 }
   0xc   : > { %s715_s18 = scalar_select %p27_p1, %s652_s11, %s29_s16  }
   0xd   : > { %p717_p5 = por %p37_p2, %p36_p0  ;;  %p721_p6 = por %p43_p4, %p42_p3 }
   0xe   : > { %p66_p7 = scmp.eq.s32.totalorder %s699_s13, 1  ;;  %p72_p8 = scmp.eq.s32.totalorder %s449_s14, 1 }
   0xf   : > { %s883_s20 = scalar_select %p721_p6, 1, 0 }
  0x10   : > { %p492_p10 = scmp.lt.s32.totalorder %s656_s12, 2  ;;  %p728_p11 = por %p66_p7, %p36_p0 }
  0x11   : > { %p732_p12 = por %p72_p8, %p42_p3  ;;  %s118_s23 = sand.u32 1, %s652_s11  }
  0x12   : > { %s884_s21 = scalar_select %p728_p11, 1, 0 }
  0x13   : > { %s885_s22 = scalar_select %p732_p12, 1, 0 }
  0x14   : > { %s472_s24 = sshll.u32 %s656_s12, 7  ;;  %s452_s25 = sshll.u32 %s118_s23, 3 }
  0x15   : > { %s741_s28 = scalar_lea.hbm %s877_s0, %s472_s24  ;;  %s122_s29 = scalar_lea.vmem [#allocation2], %s452_s25 }
  0x16   : > { %s130_s30 = sshll.u32 %s122_s29, 4  ;;  %p745_p13 = pnand %p492_p10, %p717_p5  ;;  %s749_s30 = int_to_ptr.vmem [resolvable:$true] %s130_s30 }
  0x17   : > { %s119_s4 = scalar_lea.sflag [#allocation3], %s118_s23  ;;  %s534_s5 = scalar_lea.hbm %s741_s28, 128 }
  0x18   : > { %p535_p2 = scmp.ne.s32.totalorder %s741_s28, %s534_s5  ;;  %p536_p3 = pneg %p745_p13 }
  0x19   : > { %s539_s8 = scalar_lea.hbm %s877_s0, 256  ;;  %p540_p5 = scmp.lt.s32.totalorder %s741_s28, %s877_s0 }
  0x1a   : > { %p537_p4 = pnand %p536_p3, %p535_p2  ;;  %p541_p8 = scmp.lt.s32.totalorder %s539_s8, %s534_s5 }
  0x1c   : > { %p538_p7 = pneg %p537_p4  ;;  %p542_p10 = por %p541_p8, %p540_p5 }
  0x1e   : > { %p543_p9 = pnand %p542_p10, %p538_p7 }
  0x20   : > { %546 = shalt.err (!%p543_p9)
}
  0x21   : > { %s547_s17 = scalar_lea.vmem %s749_s30, 128  ;;  %s658_s19 = smov [#allocation2]  }
  0x22   : > { %p548_p0 = scmp.ne.s32.totalorder %s749_s30, %s547_s17  ;;  %s552_s23 = sshll.u32 %s658_s19, 4  ;;  %s553_s23 = int_to_ptr.vmem [resolvable:$false] %s552_s23 }
  0x23   : > { %s554_s24 = scalar_lea.vmem %s553_s23, 256  ;;  %p555_p4 = scmp.lt.s32.totalorder %s749_s30, %s553_s23 }
  0x24   : > { %p550_p1 = pnand %p548_p0, %p536_p3  ;;  %p556_p12 = scmp.lt.s32.totalorder %s554_s24, %s547_s17 }
  0x26   : > { %p551_p2 = pneg %p550_p1  ;;  %p557_p11 = por %p556_p12, %p555_p4 }
  0x28   : > { %p558_p6 = pnand %p557_p11, %p551_p2 }
  0x2a   : > { %561 = shalt.err (!%p558_p6)
}
  0x2b   : > { %484 = dma.hbm_to_vmem [thread:$0]  (!%p745_p13), %s741_s28, 128, %s749_s30, %s119_s4  }
  0x2c   : > { %p887_p9 = scmp.lt.s32.totalorder %s656_s12, 3  ;;  %p888_p7 = scmp.ge.s32.totalorder %s656_s12, 1 }
  0x2e   : > { %p136_p0 = pnand %p888_p7, %p887_p9 }
  0x2f   : > { %s776_s25 = sand.u32 (!%p136_p0), 1, %s648_s10   ;;  %p889_p6 = scmp.ne.s32.totalorder (!%p136_p0), %s883_s20, 0 }
  0x30   : > { %139 = sbr.rel (%p136_p0) target bundleno = 151 (0x97), region = 24  ;;  %s456_s26 = sshll.u32 (!%p136_p0), %s776_s25, 3 }
  0x31   : > { %s142_s27 = scalar_lea.sflag (!%p136_p0), [#allocation3], %s776_s25  ;;  %s145_s29 = scalar_lea.vmem (!%p136_p0), [#allocation2], %s456_s26 }
  0x35   : > { %631 = dma.done.wait (%p889_p6), %s142_s27, 128  }
  0x36   : > { %633 = vsyncadd (%p889_p6), %s142_s27, 4294967168  ;;  %v174_v0 = vld [vmem:[%s145_s29] sm:$0xff]  ;;  %v195_v6 = vlaneseq  ;;  %v659_v18 = vmov -0.5   ;;  %v660_v25 = vmov 1966171168   ;;  %vm298_vm4 = vcmask 1040384  }
  0x37   : > { %v175_v1 = vand.u32 2147483647, %v174_v0  ;;  %vm180_vm0 = vcmp.ge.f32.partialorder %v174_v0, 0.0  ;;  %v184_v16 = vmax.f32 %v174_v0, 0.0  ;;  %v241_v26 = vunpack.c.l.s4 %v660_v25  ;;  %s458_s20 = sshll.u32 %s776_s25, 2  ;;  %s457_s28 = sshll.u32 %s776_s25, 1 }
  0x38   : > { %v785_v8 = vshrl.u32 %v195_v6, 7  ;;  %s170_s30 = scalar_lea.vmem [#allocation6], %s458_s20  ;;  %s474_s4 = sshll.u32 %s699_s13, 6  ;;  %vm809_vm5 = vcmp.lt.s32.totalorder %v195_v6, 256 }
  0x39   : > { %v176_v2 = vsub.f32 0.0, %v175_v1  ;;  %v242_v36 = vunpack.c.0.s8 %v241_v26  ;;  %s347_s3 = sshll.u32 %s170_s30, 4  ;;  %s794_s5 = scalar_lea.vmem [#allocation5], %s457_s28  ;;  %s798_s3 = int_to_ptr.vmem [resolvable:$true] %s347_s3 }
  0x3a   : > { %vm197_vm1 = vcmp.eq.s32.totalorder %v785_v8, 0  ;;  %vm199_vm3 = vcmp.lt.s32.totalorder %v785_v8, 2  ;;  %s333_s6 = sshll.u32 %s794_s5, 4  ;;  %s803_s14 = scalar_lea.hbm %s879_s2, %s474_s4  ;;  %s806_s6 = int_to_ptr.vmem [resolvable:$true] %s333_s6 }
  0x3b   : > { %v177_v3 = vmul.f32 1.442695, %v176_v2  ;;  %v198_v19 = vsel %vm197_vm1, -1.5, %v659_v18  ;;  %s473_s16 = sshll.u32 %s699_s13, 5  ;;  %s319_s17 = scalar_lea.sflag [#allocation7], %s776_s25 }
  0x3c   : > { %s562_s19 = scalar_lea.vmem %s798_s3, 64  ;;  %p892_p12 = scmp.ne.s32.totalorder %s884_s21, 0 }
  0x3d   : > { %528 = vpow2.f32 %v177_v3  ;;  %p563_p11 = scmp.ne.s32.totalorder %s798_s3, %s562_s19  ;;  %s661_s23 = smov [#allocation6]  }
  0x3e   : > { %s566_s24 = sshll.u32 %s661_s23, 4  ;;  %s567_s24 = int_to_ptr.vmem [resolvable:$false] %s566_s24 }
  0x3f   : > { %p564_p13 = pnand %p563_p11, %p892_p12  ;;  %s568_s26 = scalar_lea.vmem %s567_s24, 128 }
  0x40   : > { %p569_p3 = scmp.lt.s32.totalorder %s798_s3, %s567_s24  ;;  %p570_p5 = scmp.lt.s32.totalorder %s568_s26, %s562_s19 }
  0x41   : > { %p565_p1 = pneg %p564_p13 }
  0x42   : > { %p571_p8 = por %p570_p5, %p569_p3 }
  0x44   : > { %p572_p10 = pnand %p571_p8, %p565_p1 }
  0x4a   : > { %v529_v4 = vpop.eup %528 }
  0x4b   : > { %v179_v5 = vadd.f32 1.0, %v529_v4  ;;  %v188_v7 = vmul.f32 -0.5, %v529_v4  ;;  %v191_v10 = vand.u32 2147483647, %v529_v4  ;;  %v181_v11 = vsel %vm180_vm0, 1.0, %v529_v4 }
  0x4d   : > { %530 = vrcp.f32 %v179_v5  ;;  %v189_v9 = vadd.f32 1.0, %v188_v7  ;;  %vm192_vm2 = vcmp.lt.f32.partialorder %v191_v10, 0.0004427343 }
  0x4e   : > { %532 = vlog2.f32 %v179_v5 }
  0x4f   : > { %v190_v13 = vmul.f32 %v529_v4, %v189_v9 }
  0x5a   : > { %v531_v12 = vpop.eup %530 }
  0x5b   : > { %v533_v14 = vpop.eup %532  ;;  %v183_v15 = vmul.f32 %v531_v12, %v181_v11 }
  0x5c   : > { %v187_v17 = vmul.f32 0.6931472, %v533_v14 }
  0x5d   : > { %v200_v20 = vmul.f32 3.0, %v183_v15  ;;  %v245_v15 = vsub.s32 %v242_v36, %v785_v8 }
  0x5e   : > { %v193_v21 = vsel %vm192_vm2, %v190_v13, %v187_v17 }
  0x5f   : > { %v194_v22 = vadd.f32 %v193_v21, %v184_v16  ;;  %v202_v23 = vcombine.high %v200_v20, %v200_v20  ;;  %v204_v24 = vadd.f32 %v200_v20, %v198_v19 }
  0x61   : > { %v205_v27 = vadd.f32 %v202_v23, %v198_v19  ;;  %v207_v28 = vcombine.high %v194_v22, %v194_v22  ;;  %v209_v29 = vsel %vm199_vm3, %v204_v24, %v194_v22 }
  0x62   : > { %v215_v30 = vmul.f32 %v209_v29, %v209_v29  ;;  %v459_v31 = vadd.f32 -1.0, %v209_v29  ;;  %v268_v32 = vrot.slane %v209_v29, 1  ;;  %v211_v37 = vsub.f32 1.0, %v209_v29 }
  0x63   : > { %v210_v33 = vsel %vm199_vm3, %v205_v27, %v207_v28  ;;  %v286_v44 = vrot.slane %v209_v29, 3  ;;  %v276_v55 = vrot.slane %v209_v29, 2 }
  0x64   : > { %v216_v34 = vmul.f32 %v210_v33, %v210_v33  ;;  %v219_v35 = vrot.slane %v215_v30, 7  ;;  %v460_v38 = vadd.f32 -1.0, %v210_v33  ;;  %v262_v39 = vmul.f32 %v459_v31, %v459_v31 }
  0x65   : > { %v269_v40 = vrot.slane %v210_v33, 1  ;;  %v282_v43 = vadd.f32 %v268_v32, %v209_v29  ;;  %v287_v48 = vrot.slane %v210_v33, 3  ;;  %v212_v49 = vsub.f32 1.0, %v210_v33 }
  0x66   : > { %v220_v41 = vrot.slane %v216_v34, 7  ;;  %v223_v42 = vsub.f32 %v209_v29, %v219_v35  ;;  %v263_v45 = vmul.f32 %v460_v38, %v460_v38  ;;  %v264_v46 = vmul.f32 %v459_v31, %v262_v39 }
  0x67   : > { %v283_v47 = vadd.f32 %v269_v40, %v210_v33  ;;  %v461_v52 = vadd.f32 -2.0, %v282_v43  ;;  %v213_v57 = vmul.f32 %v211_v37, %v211_v37  ;;  %v277_v63 = vrot.slane %v210_v33, 2 }
  0x68   : > { %v224_v50 = vsub.f32 %v210_v33, %v220_v41  ;;  %v225_v51 = vmul.f32 %v223_v42, %v223_v42  ;;  %v265_v53 = vmul.f32 %v460_v38, %v263_v45  ;;  %v272_v54 = vsub.f32 %v264_v46, %v268_v32 }
  0x69   : > { %v462_v56 = vadd.f32 -2.0, %v283_v47  ;;  %v290_v60 = vadd.f32 %v461_v52, %v286_v44  ;;  %v214_v1 = vmul.f32 %v212_v49, %v212_v49 }
  0x6a   : > { %v226_v58 = vmul.f32 %v224_v50, %v224_v50  ;;  %v227_v59 = vmul.f32 100.0, %v225_v51  ;;  %v273_v61 = vsub.f32 %v265_v53, %v269_v40  ;;  %v274_v62 = vadd.f32 1.0, %v272_v54 }
  0x6b   : > { %v291_v0 = vadd.f32 %v462_v56, %v287_v48  ;;  %v294_v4 = vrot.slane %v290_v60, 7 }
  0x6c   : > { %v228_v2 = vmul.f32 100.0, %v226_v58  ;;  %v231_v3 = vrot.slane %v227_v59, 1  ;;  %v275_v5 = vadd.f32 1.0, %v273_v61  ;;  %v280_v7 = vadd.f32 %v276_v55, %v274_v62 }
  0x6d   : > { %v295_v9 = vrot.slane %v291_v0, 7 }
  0x6e   : > { %v232_v10 = vrot.slane %v228_v2, 1  ;;  %v235_v11 = vadd.f32 %v231_v3, %v213_v57  ;;  %v281_v12 = vadd.f32 %v277_v63, %v275_v5  ;;  %v299_v13 = vsel %vm298_vm4, %v280_v7, %v294_v4 }
  0x70   : > { %v236_v14 = vadd.f32 %v232_v10, %v214_v1  ;;  %v300_v16 = vsel %vm298_vm4, %v281_v12, %v295_v9 }
  0x71   : > { %v303_v18 = vcombine.low %v299_v13, %v300_v16 }
  0x72   : > { %v239_v17 = vcombine.low %v235_v11, %v236_v14 }
  0x73   : > { %463 = vst.sshfl [vmem:[%s170_s30] sm:$0x33 pattern:$0x76325410] %v303_v18 }
  0x74   : > { %v246_v8 = vrot.slane %v239_v17, %v245_v15 }
  0x75   : > { %575 = shalt.err (!%p572_p10)
}
  0x76   : > { %s576_s27 = scalar_lea.hbm %s803_s14, 64  ;;  %s580_s28 = scalar_lea.hbm %s879_s2, 128 }
  0x77   : > { %p577_p2 = scmp.ne.s32.totalorder %s803_s14, %s576_s27  ;;  %p581_p7 = scmp.lt.s32.totalorder %s803_s14, %s879_s2 }
  0x78   : > { %p582_p0 = scmp.lt.s32.totalorder %s580_s28, %s576_s27 }
  0x79   : > { %p578_p4 = pnand %p577_p2, %p892_p12 }
  0x7a   : > { %p583_p6 = por %p582_p0, %p581_p7 }
  0x7b   : > { %p579_p9 = pneg %p578_p4 }
  0x7d   : > { %p584_p11 = pnand %p583_p6, %p579_p9 }
  0x7f   : > { %587 = shalt.err (!%p584_p11)
}
  0x80   : > { %478 = dma.vmem_to_hbm [thread:$0]  (%p892_p12), %s798_s3, 64, %s803_s14, %s319_s17   ;;  %v253_v6 = vrot.slane %v246_v8, %v245_v15 }
  0x81   : > { %s331_s19 = scalar_lea.hbm %s878_s1, %s473_s16  ;;  %s314_s23 = scalar_lea.sflag [#allocation4], %s776_s25 }
  0x82   : > { %259 = vst.msk [vmem:[%s794_s5] sm:$0x3] %vm809_vm5, %v253_v6  ;;  %s588_s24 = scalar_lea.vmem %s806_s6, 32  ;;  %s662_s26 = smov [#allocation5]  }
  0x83   : > { %p589_p13 = scmp.ne.s32.totalorder %s806_s6, %s588_s24  ;;  %s592_s27 = sshll.u32 %s662_s26, 4  ;;  %s593_s27 = int_to_ptr.vmem [resolvable:$false] %s592_s27 }
  0x84   : > { %s594_s29 = scalar_lea.vmem %s593_s27, 64  ;;  %p595_p5 = scmp.lt.s32.totalorder %s806_s6, %s593_s27 }
  0x85   : > { %p590_p1 = pnand %p589_p13, %p892_p12  ;;  %p596_p8 = scmp.lt.s32.totalorder %s594_s29, %s588_s24 }
  0x87   : > { %p591_p3 = pneg %p590_p1  ;;  %p597_p10 = por %p596_p8, %p595_p5 }
  0x89   : > { %p598_p2 = pnand %p597_p10, %p591_p3 }
  0x8b   : > { %601 = shalt.err (!%p598_p2)
}
  0x8c   : > { %s602_s13 = scalar_lea.hbm %s331_s19, 32  ;;  %s606_s5 = scalar_lea.hbm %s878_s1, 64 }
  0x8d   : > { %p603_p4 = scmp.ne.s32.totalorder %s331_s19, %s602_s13  ;;  %p607_p0 = scmp.lt.s32.totalorder %s331_s19, %s878_s1 }
  0x8e   : > { %p608_p6 = scmp.lt.s32.totalorder %s606_s5, %s602_s13 }
  0x8f   : > { %p604_p9 = pnand %p603_p4, %p892_p12 }
  0x90   : > { %p609_p11 = por %p608_p6, %p607_p0 }
  0x91   : > { %p605_p7 = pneg %p604_p9 }
  0x93   : > { %p610_p13 = pnand %p609_p11, %p605_p7 }
  0x95   : > { %613 = shalt.err (!%p610_p13)
}
  0x96   : > { %477 = dma.vmem_to_hbm [thread:$0]  (%p892_p12), %s806_s6, 32, %s331_s19, %s314_s23  }
  0x97 PF: > { %s359_s17 = sand.u32 1, %s644_s9   ;;  %p893_p1 = scmp.ne.s32.totalorder %s885_s22, 0 }
  0x98   : > { %p894_p3 = scmp.ge.s32.totalorder %s656_s12, 2  ;;  %s360_s20 = scalar_lea.sflag [#allocation4], %s359_s17 }
  0x9a   : > { %p486_p5 = pnand %p894_p3, %p893_p1 }
  0x9c   : > { %p487_p8 = pneg %p486_p5 }
  0x9e   : > { %635 = dma.done.wait (%p487_p8), %s360_s20, 32  }
  0x9f   : > { %637 = vsyncadd (%p487_p8), %s360_s20, 4294967264  ;;  %s369_s28 = scalar_lea.sflag [#allocation7], %s359_s17 }
  0xa0   : > { %639 = dma.done.wait (%p487_p8), %s369_s28, 64  }
  0xa1   : > { %641 = vsyncadd (%p487_p8), %s369_s28, 4294967232  ;;  %p19_p12 = scmp.ge.s32.totalorder %s703_s15, 4   ;;  %s895_s9 = smov %s648_s10 }
  0xa2   : > { %s896_s10 = smov %s652_s11  ;;  %s897_s11 = smov %s715_s18 }
  0xa3   : > { %s898_s12 = smov %s703_s15  ;;  %21 = sbr.rel (!%p19_p12) target bundleno = 7 (0x7), region = 86 }
  0xa8   :  { %374 = vsyncpa [#allocation3], 1 }
  0xa9   :  { %376 = vsyncpa [#allocation3 + $0x1], 1 }
  0xaa   :  { %377 = vsyncpa [#allocation4], 1 }
  0xab   :  { %379 = vsyncpa [#allocation4 + $0x1], 1 }
  0xac   :  { %380 = vsyncpa [#allocation7], 1 }
  0xad   :  { %382 = vsyncpa [#allocation7 + $0x1], 1 }

</bundles_post_ra>
